<compile_context>
chip_gen: v5e
topology: v5e:2x2
jax: 0.10.0
libtpu: 0.0.40
codegen_flags: <defaults>
</compile_context>

<pallas_src>
import functools
import math

import jax
import jax.numpy as jnp
from jax import lax
from jax.experimental import pallas as pl
from jax.experimental.pallas import tpu as pltpu


def _self_attention_kernel(x_ref, wqkv_ref, bqkv_ref, wo_ref, bo_ref, o_ref,
                           *, num_heads: int, approx_reciprocal: bool):
    """One grid step == one batch element.  x_ref / o_ref are (S, E)."""
    S, E = x_ref.shape
    D = E // num_heads
    cdt = x_ref.dtype                       # matmul-input (compute) dtype

    # Fused Q/K/V projection: one (S,E)@(E,3E) MXU matmul with f32
    # accumulation, then a single cast of the whole (S,3E) tile to the compute
    # dtype (the per-head operands are cast before the MXU anyway -> exact,
    # and it halves the live qkv footprint).
    qkv = lax.dot_general(x_ref[...], wqkv_ref[...],
                          (((1,), (0,)), ((), ())),
                          preferred_element_type=jnp.float32)
    qkv = (qkv + bqkv_ref[...]).astype(cdt)          # (S, 3E); q pre-scaled

    # Per-head attention fused with the output projection: each head output is
    # pushed straight through its W_o row-slice and accumulated in f32, so no
    # (S,E) scratch and no sub-128-lane masked stores of head outputs.
    acc = jnp.zeros((S, E), jnp.float32)
    for h in range(num_heads):              # heads are few + static: unroll
        lo = h * D
        q_h = qkv[:, lo:lo + D]                        # (S, D)
        k_h = qkv[:, E + lo:E + lo + D]                # (S, D)
        v_h = qkv[:, 2 * E + lo:2 * E + lo + D]        # (S, D)

        # scores = q_h @ k_h^T  ("NT" matmul, no explicit transpose op).
        s = lax.dot_general(q_h, k_h, (((1,), (1,)), ((), ())),
                            preferred_element_type=jnp.float32)  # (S,S) f32
        s = s - jnp.max(s, axis=-1, keepdims=True)   # f32 softmax (v5e-safe)
        p = jnp.exp(s)
        l = jnp.sum(p, axis=-1, keepdims=True)       # (S, 1)

        h_out = lax.dot_general(p.astype(cdt), v_h,
                                (((1,), (0,)), ((), ())),
                                preferred_element_type=jnp.float32)  # (S, D)
        # Normalize the (S,D) head output (not the (S,S) probs).  The approx
        # reciprocal lives in the EUP slot and is effectively free.
        if approx_reciprocal:
            h_out = h_out * pl.reciprocal(l, approx=True)
        else:
            h_out = h_out / l

        # Fused per-head output projection: (S,D) @ (D,E), f32 accumulation.
        acc = acc + lax.dot_general(h_out.astype(cdt), wo_ref[lo:lo + D, :],
                                    (((1,), (0,)), ((), ())),
                                    preferred_element_type=jnp.float32)

    o_ref[...] = (acc + bo_ref[...]).astype(o_ref.dtype)


def _vmem_capacity_bytes():
    """Physical per-core VMEM, with a conservative (v7x-sized) fallback."""
    try:
        info = pltpu.get_tpu_info()
        cap = getattr(info, "vmem_capacity_bytes", None)
        if cap:
            return int(cap)
    except Exception:
        pass
    return 64 * 2 ** 20


def self_attention(x, params, num_heads, *, compute_dtype=jnp.bfloat16,
                   approx_reciprocal=True):
    """x: (B, S, E). params: PyTorch-convention weights (out,in) and biases."""
    B, S, E = x.shape
    assert E % num_heads == 0
    D = E // num_heads
    scale = 1.0 / math.sqrt(D)

    # Host-side weight prep: transpose to (in,out), fuse QKV, fold the q-scale,
    # drop the key bias (q_i . b_k is constant across keys -> cancels exactly
    # in softmax).
    w_qkv = jnp.concatenate(
        [params["q_w"].T * scale, params["k_w"].T, params["v_w"].T],
        axis=1).astype(compute_dtype)                          # (E, 3E)
    b_qkv = jnp.concatenate(
        [params["q_b"] * scale, jnp.zeros_like(params["k_b"]), params["v_b"]]
    ).reshape(1, 3 * E).astype(jnp.float32)                    # (1, 3E)
    w_o = params["o_w"].T.astype(compute_dtype)                # (E, E)
    b_o = params["o_b"].reshape(1, E).astype(jnp.float32)      # (1, E)
    x_c = x.astype(compute_dtype)

    # Real resident-VMEM footprint.
    cb = jnp.dtype(compute_dtype).itemsize
    ob = x.dtype.itemsize
    est = (2 * S * E * cb                  # x block, double-buffered
           + 2 * S * E * ob                # out block, double-buffered
           + (3 * E * E + E * E) * cb      # W_qkv + W_o, single-buffered
           + (3 * E + E) * 4               # fused biases (f32)
           + S * 3 * E * 4                 # f32 qkv accumulator (pre-cast)
           + S * 3 * E * cb                # qkv in compute dtype
           + 2 * S * S * 4                 # (S,S) scores + probs, f32
           + S * E * 4                     # f32 output accumulator
           + 2 * S * D * 4)                # per-head (S,D) temporaries
    # 1.5x headroom for Mosaic internal scratch; never below 32 MiB and never
    # above ~80% of physical VMEM (v7x: ~51 of 64 MiB; v5e/v6e: ~102 of 128).
    vmem_limit = int(min(int(0.8 * _vmem_capacity_bytes()),
                         max(32 * 2 ** 20, int(1.5 * est))))

    kernel = functools.partial(_self_attention_kernel, num_heads=num_heads,
                               approx_reciprocal=approx_reciprocal)

    def build_and_call(single_buffer_weights):
        if single_buffer_weights:
            # Grid-invariant weights/biases: single-buffer them (block index
            # never changes, so 2-deep buffering only doubles VMEM).
            const = lambda shape: pl.BlockSpec(
                shape, lambda b: (0,) * len(shape),
                pipeline_mode=pl.Buffered(buffer_count=1))
        else:
            const = lambda shape: pl.BlockSpec(
                shape, lambda b: (0,) * len(shape))
        return pl.pallas_call(
            kernel,
            out_shape=jax.ShapeDtypeStruct((B, S, E), x.dtype),
            grid_spec=pltpu.PrefetchScalarGridSpec(
                num_scalar_prefetch=0,
                grid=(B,),
                in_specs=[
                    pl.BlockSpec((pl.Squeezed(), S, E),
                                 lambda b: (b, 0, 0)),   # x
                    const((E, 3 * E)),   # fused W_qkv
                    const((1, 3 * E)),   # fused b_qkv (k-bias zeroed)
                    const((E, E)),       # W_out
                    const((1, E)),       # b_out
                ],
                out_specs=pl.BlockSpec((pl.Squeezed(), S, E),
                                       lambda b: (b, 0, 0)),
            ),
            compiler_params=pltpu.CompilerParams(
                dimension_semantics=("parallel",),
                vmem_limit_bytes=vmem_limit),
        )(x_c, w_qkv, b_qkv, w_o, b_o)

    try:
        return build_and_call(True)
    except Exception:
        # Fallback if this JAX build rejects pl.Buffered(1) on pallas_call
        # BlockSpecs: default double-buffering is correct, just uses more VMEM.
        return build_and_call(False)


def _reference(x, params, num_heads):
    """Pure-JAX f32 reference mirroring the PyTorch forward."""
    B, S, E = x.shape
    D = E // num_heads
    q = x @ params["q_w"].T + params["q_b"]
    k = x @ params["k_w"].T + params["k_b"]
    v = x @ params["v_w"].T + params["v_b"]
    q = q.reshape(B, S, num_heads, D).transpose(0, 2, 1, 3)
    k = k.reshape(B, S, num_heads, D).transpose(0, 2, 1, 3)
    v = v.reshape(B, S, num_heads, D).transpose(0, 2, 1, 3)
    s = jnp.einsum("bhqd,bhkd->bhqk", q, k) / math.sqrt(D)
    p = jax.nn.softmax(s, axis=-1)
    o = jnp.einsum("bhqk,bhkd->bhqd", p, v)
    o = o.transpose(0, 2, 1, 3).reshape(B, S, E)
    return o @ params["o_w"].T + params["o_b"]


if __name__ == "__main__":
    B, S, E, H = 2, 8, 32, 4

    key = jax.random.PRNGKey(0)
    keys = jax.random.split(key, 9)
    init = lambda k, shape: (jax.random.normal(k, shape, jnp.float32)
                             * (1.0 / math.sqrt(E)))
    params = {
        "q_w": init(keys[0], (E, E)), "q_b": init(keys[1], (E,)),
        "k_w": init(keys[2], (E, E)), "k_b": init(keys[3], (E,)),
        "v_w": init(keys[4], (E, E)), "v_b": init(keys[5], (E,)),
        "o_w": init(keys[6], (E, E)), "o_b": init(keys[7], (E,)),
    }
    x = jax.random.normal(keys[8], (B, S, E), jnp.float32)

    ref = _reference(x, params, H)

    # f32 compute path with approx reciprocal (default).
    out_f32 = jax.block_until_ready(
        self_attention(x, params, H, compute_dtype=jnp.float32))
    assert out_f32.shape == ref.shape and out_f32.dtype == ref.dtype
    assert jnp.allclose(out_f32, ref, atol=1e-2, rtol=1e-2), "f32 mismatch"

    # f32 compute path with exact reciprocal (configurable parity knob).
    out_f32_exact = jax.block_until_ready(
        self_attention(x, params, H, compute_dtype=jnp.float32,
                       approx_reciprocal=False))
    assert jnp.allclose(out_f32_exact, ref, atol=1e-2, rtol=1e-2), \
        "f32 exact-reciprocal mismatch"

    # bf16 matmul-input path (the v5e/v6e/v7x MXU fast path) -> looser tol.
    out_bf16 = jax.block_until_ready(
        self_attention(x, params, H, compute_dtype=jnp.bfloat16))
    assert jnp.allclose(out_bf16, ref, atol=1e-1, rtol=1e-1), "bf16 mismatch"

    print("KERNEL_OK")
</pallas_src>

<mosaic_0001>
module attributes {stable_mosaic.version = 11 : i64} {
  func.func @_self_attention_kernel(%arg0: i32, %arg1: memref<1x8x32xf32, #tpu.memory_space<vmem>>, %arg2: memref<32x96xf32, #tpu.memory_space<vmem>>, %arg3: memref<1x96xf32, #tpu.memory_space<vmem>>, %arg4: memref<32x32xf32, #tpu.memory_space<vmem>>, %arg5: memref<1x32xf32, #tpu.memory_space<vmem>>, %arg6: memref<1x8x32xf32, #tpu.memory_space<vmem>>) attributes {dimension_semantics = [#tpu.dimension_semantics<parallel>], iteration_bounds = array<i64: 2>, scalar_prefetch = 0 : i64, scratch_operands = 0 : i64, tpu.core_type = #tpu.core_type<tc>, window_params = [{transform_indices = @transform_0, window_bounds = array<i64: 1, 8, 32>}, {pipeline_mode = #tpu.pipeline_mode<synchronous>, transform_indices = @transform_1, window_bounds = array<i64: 32, 96>}, {pipeline_mode = #tpu.pipeline_mode<synchronous>, transform_indices = @transform_2, window_bounds = array<i64: 1, 96>}, {pipeline_mode = #tpu.pipeline_mode<synchronous>, transform_indices = @transform_3, window_bounds = array<i64: 32, 32>}, {pipeline_mode = #tpu.pipeline_mode<synchronous>, transform_indices = @transform_4, window_bounds = array<i64: 1, 32>}, {transform_indices = @transform_5, window_bounds = array<i64: 1, 8, 32>}]} {
    %c0 = arith.constant 0 : index
    %c0_0 = arith.constant 0 : index
    %c0_1 = arith.constant 0 : index
    %0 = vector.load %arg1[%c0, %c0_0, %c0_1] : memref<1x8x32xf32, #tpu.memory_space<vmem>>, vector<1x8x32xf32>
    %1 = vector.shape_cast %0 : vector<1x8x32xf32> to vector<8x32xf32>
    %c0_2 = arith.constant 0 : index
    %c0_3 = arith.constant 0 : index
    %2 = vector.load %arg2[%c0_2, %c0_3] : memref<32x96xf32, #tpu.memory_space<vmem>>, vector<32x96xf32>
    %cst = arith.constant dense<0.000000e+00> : vector<8x96xf32>
    %3 = tpu.matmul %1, %2, %cst {dimension_numbers = #tpu.dot_dimension_numbers<[1], [0], [0], [1], [0, 0, 1, 1], [], []>} : vector<8x32xf32>, vector<32x96xf32>, vector<8x96xf32> -> vector<8x96xf32>
    %c0_4 = arith.constant 0 : index
    %c0_5 = arith.constant 0 : index
    %4 = vector.load %arg3[%c0_4, %c0_5] : memref<1x96xf32, #tpu.memory_space<vmem>>, vector<1x96xf32>
    %5 = vector.broadcast %4 : vector<1x96xf32> to vector<8x96xf32>
    %6 = arith.addf %3, %5 : vector<8x96xf32>
    %cst_6 = arith.constant 0.000000e+00 : f32
    %7 = vector.broadcast %cst_6 : f32 to vector<8x32xf32>
    %8 = vector.extract_strided_slice %6 {offsets = [0, 0], sizes = [8, 8], strides = [1, 1]} : vector<8x96xf32> to vector<8x8xf32>
    %9 = vector.extract_strided_slice %6 {offsets = [0, 32], sizes = [8, 8], strides = [1, 1]} : vector<8x96xf32> to vector<8x8xf32>
    %10 = vector.extract_strided_slice %6 {offsets = [0, 64], sizes = [8, 8], strides = [1, 1]} : vector<8x96xf32> to vector<8x8xf32>
    %cst_7 = arith.constant dense<0.000000e+00> : vector<8x8xf32>
    %11 = tpu.matmul %8, %9, %cst_7 {dimension_numbers = #tpu.dot_dimension_numbers<[1], [1], [0], [0], [0, 0, 1, 0], [], []>} : vector<8x8xf32>, vector<8x8xf32>, vector<8x8xf32> -> vector<8x8xf32>
    %cst_8 = arith.constant dense<0xFF800000> : vector<8xf32>
    %12 = vector.multi_reduction <maximumf>, %11, %cst_8 [1] : vector<8x8xf32> to vector<8xf32>
    %13 = vector.shape_cast %12 : vector<8xf32> to vector<8x1xf32>
    %14 = vector.broadcast %13 : vector<8x1xf32> to vector<8x8xf32>
    %15 = arith.subf %11, %14 : vector<8x8xf32>
    %16 = math.exp %15 : vector<8x8xf32>
    %cst_9 = arith.constant dense<0.000000e+00> : vector<8xf32>
    %17 = vector.multi_reduction <add>, %16, %cst_9 [1] : vector<8x8xf32> to vector<8xf32>
    %18 = vector.shape_cast %17 : vector<8xf32> to vector<8x1xf32>
    %cst_10 = arith.constant dense<0.000000e+00> : vector<8x8xf32>
    %19 = tpu.matmul %16, %10, %cst_10 {dimension_numbers = #tpu.dot_dimension_numbers<[1], [0], [0], [1], [0, 0, 1, 1], [], []>} : vector<8x8xf32>, vector<8x8xf32>, vector<8x8xf32> -> vector<8x8xf32>
    %20 = tpu.reciprocal %18 {approx = true} : vector<8x1xf32> -> vector<8x1xf32>
    %21 = vector.broadcast %20 : vector<8x1xf32> to vector<8x8xf32>
    %22 = arith.mulf %19, %21 : vector<8x8xf32>
    %c0_11 = arith.constant 0 : index
    %c0_12 = arith.constant 0 : index
    %23 = vector.load %arg4[%c0_11, %c0_12] : memref<32x32xf32, #tpu.memory_space<vmem>>, vector<8x32xf32>
    %cst_13 = arith.constant dense<0.000000e+00> : vector<8x32xf32>
    %24 = tpu.matmul %22, %23, %cst_13 {dimension_numbers = #tpu.dot_dimension_numbers<[1], [0], [0], [1], [0, 0, 1, 1], [], []>} : vector<8x8xf32>, vector<8x32xf32>, vector<8x32xf32> -> vector<8x32xf32>
    %25 = arith.addf %7, %24 : vector<8x32xf32>
    %26 = vector.extract_strided_slice %6 {offsets = [0, 8], sizes = [8, 8], strides = [1, 1]} : vector<8x96xf32> to vector<8x8xf32>
    %27 = vector.extract_strided_slice %6 {offsets = [0, 40], sizes = [8, 8], strides = [1, 1]} : vector<8x96xf32> to vector<8x8xf32>
    %28 = vector.extract_strided_slice %6 {offsets = [0, 72], sizes = [8, 8], strides = [1, 1]} : vector<8x96xf32> to vector<8x8xf32>
    %cst_14 = arith.constant dense<0.000000e+00> : vector<8x8xf32>
    %29 = tpu.matmul %26, %27, %cst_14 {dimension_numbers = #tpu.dot_dimension_numbers<[1], [1], [0], [0], [0, 0, 1, 0], [], []>} : vector<8x8xf32>, vector<8x8xf32>, vector<8x8xf32> -> vector<8x8xf32>
    %cst_15 = arith.constant dense<0xFF800000> : vector<8xf32>
    %30 = vector.multi_reduction <maximumf>, %29, %cst_15 [1] : vector<8x8xf32> to vector<8xf32>
    %31 = vector.shape_cast %30 : vector<8xf32> to vector<8x1xf32>
    %32 = vector.broadcast %31 : vector<8x1xf32> to vector<8x8xf32>
    %33 = arith.subf %29, %32 : vector<8x8xf32>
    %34 = math.exp %33 : vector<8x8xf32>
    %cst_16 = arith.constant dense<0.000000e+00> : vector<8xf32>
    %35 = vector.multi_reduction <add>, %34, %cst_16 [1] : vector<8x8xf32> to vector<8xf32>
    %36 = vector.shape_cast %35 : vector<8xf32> to vector<8x1xf32>
    %cst_17 = arith.constant dense<0.000000e+00> : vector<8x8xf32>
    %37 = tpu.matmul %34, %28, %cst_17 {dimension_numbers = #tpu.dot_dimension_numbers<[1], [0], [0], [1], [0, 0, 1, 1], [], []>} : vector<8x8xf32>, vector<8x8xf32>, vector<8x8xf32> -> vector<8x8xf32>
    %38 = tpu.reciprocal %36 {approx = true} : vector<8x1xf32> -> vector<8x1xf32>
    %39 = vector.broadcast %38 : vector<8x1xf32> to vector<8x8xf32>
    %40 = arith.mulf %37, %39 : vector<8x8xf32>
    %c8 = arith.constant 8 : index
    %c0_18 = arith.constant 0 : index
    %41 = vector.load %arg4[%c8, %c0_18] : memref<32x32xf32, #tpu.memory_space<vmem>>, vector<8x32xf32>
    %cst_19 = arith.constant dense<0.000000e+00> : vector<8x32xf32>
    %42 = tpu.matmul %40, %41, %cst_19 {dimension_numbers = #tpu.dot_dimension_numbers<[1], [0], [0], [1], [0, 0, 1, 1], [], []>} : vector<8x8xf32>, vector<8x32xf32>, vector<8x32xf32> -> vector<8x32xf32>
    %43 = arith.addf %25, %42 : vector<8x32xf32>
    %44 = vector.extract_strided_slice %6 {offsets = [0, 16], sizes = [8, 8], strides = [1, 1]} : vector<8x96xf32> to vector<8x8xf32>
    %45 = vector.extract_strided_slice %6 {offsets = [0, 48], sizes = [8, 8], strides = [1, 1]} : vector<8x96xf32> to vector<8x8xf32>
    %46 = vector.extract_strided_slice %6 {offsets = [0, 80], sizes = [8, 8], strides = [1, 1]} : vector<8x96xf32> to vector<8x8xf32>
    %cst_20 = arith.constant dense<0.000000e+00> : vector<8x8xf32>
    %47 = tpu.matmul %44, %45, %cst_20 {dimension_numbers = #tpu.dot_dimension_numbers<[1], [1], [0], [0], [0, 0, 1, 0], [], []>} : vector<8x8xf32>, vector<8x8xf32>, vector<8x8xf32> -> vector<8x8xf32>
    %cst_21 = arith.constant dense<0xFF800000> : vector<8xf32>
    %48 = vector.multi_reduction <maximumf>, %47, %cst_21 [1] : vector<8x8xf32> to vector<8xf32>
    %49 = vector.shape_cast %48 : vector<8xf32> to vector<8x1xf32>
    %50 = vector.broadcast %49 : vector<8x1xf32> to vector<8x8xf32>
    %51 = arith.subf %47, %50 : vector<8x8xf32>
    %52 = math.exp %51 : vector<8x8xf32>
    %cst_22 = arith.constant dense<0.000000e+00> : vector<8xf32>
    %53 = vector.multi_reduction <add>, %52, %cst_22 [1] : vector<8x8xf32> to vector<8xf32>
    %54 = vector.shape_cast %53 : vector<8xf32> to vector<8x1xf32>
    %cst_23 = arith.constant dense<0.000000e+00> : vector<8x8xf32>
    %55 = tpu.matmul %52, %46, %cst_23 {dimension_numbers = #tpu.dot_dimension_numbers<[1], [0], [0], [1], [0, 0, 1, 1], [], []>} : vector<8x8xf32>, vector<8x8xf32>, vector<8x8xf32> -> vector<8x8xf32>
    %56 = tpu.reciprocal %54 {approx = true} : vector<8x1xf32> -> vector<8x1xf32>
    %57 = vector.broadcast %56 : vector<8x1xf32> to vector<8x8xf32>
    %58 = arith.mulf %55, %57 : vector<8x8xf32>
    %c16 = arith.constant 16 : index
    %c0_24 = arith.constant 0 : index
    %59 = vector.load %arg4[%c16, %c0_24] : memref<32x32xf32, #tpu.memory_space<vmem>>, vector<8x32xf32>
    %cst_25 = arith.constant dense<0.000000e+00> : vector<8x32xf32>
    %60 = tpu.matmul %58, %59, %cst_25 {dimension_numbers = #tpu.dot_dimension_numbers<[1], [0], [0], [1], [0, 0, 1, 1], [], []>} : vector<8x8xf32>, vector<8x32xf32>, vector<8x32xf32> -> vector<8x32xf32>
    %61 = arith.addf %43, %60 : vector<8x32xf32>
    %62 = vector.extract_strided_slice %6 {offsets = [0, 24], sizes = [8, 8], strides = [1, 1]} : vector<8x96xf32> to vector<8x8xf32>
    %63 = vector.extract_strided_slice %6 {offsets = [0, 56], sizes = [8, 8], strides = [1, 1]} : vector<8x96xf32> to vector<8x8xf32>
    %64 = vector.extract_strided_slice %6 {offsets = [0, 88], sizes = [8, 8], strides = [1, 1]} : vector<8x96xf32> to vector<8x8xf32>
    %cst_26 = arith.constant dense<0.000000e+00> : vector<8x8xf32>
    %65 = tpu.matmul %62, %63, %cst_26 {dimension_numbers = #tpu.dot_dimension_numbers<[1], [1], [0], [0], [0, 0, 1, 0], [], []>} : vector<8x8xf32>, vector<8x8xf32>, vector<8x8xf32> -> vector<8x8xf32>
    %cst_27 = arith.constant dense<0xFF800000> : vector<8xf32>
    %66 = vector.multi_reduction <maximumf>, %65, %cst_27 [1] : vector<8x8xf32> to vector<8xf32>
    %67 = vector.shape_cast %66 : vector<8xf32> to vector<8x1xf32>
    %68 = vector.broadcast %67 : vector<8x1xf32> to vector<8x8xf32>
    %69 = arith.subf %65, %68 : vector<8x8xf32>
    %70 = math.exp %69 : vector<8x8xf32>
    %cst_28 = arith.constant dense<0.000000e+00> : vector<8xf32>
    %71 = vector.multi_reduction <add>, %70, %cst_28 [1] : vector<8x8xf32> to vector<8xf32>
    %72 = vector.shape_cast %71 : vector<8xf32> to vector<8x1xf32>
    %cst_29 = arith.constant dense<0.000000e+00> : vector<8x8xf32>
    %73 = tpu.matmul %70, %64, %cst_29 {dimension_numbers = #tpu.dot_dimension_numbers<[1], [0], [0], [1], [0, 0, 1, 1], [], []>} : vector<8x8xf32>, vector<8x8xf32>, vector<8x8xf32> -> vector<8x8xf32>
    %74 = tpu.reciprocal %72 {approx = true} : vector<8x1xf32> -> vector<8x1xf32>
    %75 = vector.broadcast %74 : vector<8x1xf32> to vector<8x8xf32>
    %76 = arith.mulf %73, %75 : vector<8x8xf32>
    %c24 = arith.constant 24 : index
    %c0_30 = arith.constant 0 : index
    %77 = vector.load %arg4[%c24, %c0_30] : memref<32x32xf32, #tpu.memory_space<vmem>>, vector<8x32xf32>
    %cst_31 = arith.constant dense<0.000000e+00> : vector<8x32xf32>
    %78 = tpu.matmul %76, %77, %cst_31 {dimension_numbers = #tpu.dot_dimension_numbers<[1], [0], [0], [1], [0, 0, 1, 1], [], []>} : vector<8x8xf32>, vector<8x32xf32>, vector<8x32xf32> -> vector<8x32xf32>
    %79 = arith.addf %61, %78 : vector<8x32xf32>
    %c0_32 = arith.constant 0 : index
    %c0_33 = arith.constant 0 : index
    %80 = vector.load %arg5[%c0_32, %c0_33] : memref<1x32xf32, #tpu.memory_space<vmem>>, vector<1x32xf32>
    %81 = vector.broadcast %80 : vector<1x32xf32> to vector<8x32xf32>
    %82 = arith.addf %79, %81 : vector<8x32xf32>
    %c0_34 = arith.constant 0 : index
    %c0_35 = arith.constant 0 : index
    %c0_36 = arith.constant 0 : index
    %83 = vector.load %arg6[%c0_34, %c0_35, %c0_36] : memref<1x8x32xf32, #tpu.memory_space<vmem>>, vector<1x8x32xf32>
    %84 = vector.shape_cast %83 : vector<1x8x32xf32> to vector<8x32xf32>
    %85 = vector.shape_cast %82 : vector<8x32xf32> to vector<1x8x32xf32>
    tpu.vector_store %arg6[%c0_34, %c0_35, %c0_36], %85 {strides = array<i32>} : memref<1x8x32xf32, #tpu.memory_space<vmem>>, vector<1x8x32xf32>,
    return
  }
  func.func @transform_0(%arg0: i32) -> (i32, i32, i32) {
    %c0_i32 = arith.constant 0 : i32
    %c0_i32_0 = arith.constant 0 : i32
    %c0_i32_1 = arith.constant 0 : i32
    return %arg0, %c0_i32, %c0_i32_0 : i32, i32, i32
  }
  func.func @transform_1(%arg0: i32) -> (i32, i32) {
    %c0_i32 = arith.constant 0 : i32
    %c0_i32_0 = arith.constant 0 : i32
    %c0_i32_1 = arith.constant 0 : i32
    return %c0_i32, %c0_i32_0 : i32, i32
  }
  func.func @transform_2(%arg0: i32) -> (i32, i32) {
    %c0_i32 = arith.constant 0 : i32
    %c0_i32_0 = arith.constant 0 : i32
    %c0_i32_1 = arith.constant 0 : i32
    return %c0_i32, %c0_i32_0 : i32, i32
  }
  func.func @transform_3(%arg0: i32) -> (i32, i32) {
    %c0_i32 = arith.constant 0 : i32
    %c0_i32_0 = arith.constant 0 : i32
    %c0_i32_1 = arith.constant 0 : i32
    return %c0_i32, %c0_i32_0 : i32, i32
  }
  func.func @transform_4(%arg0: i32) -> (i32, i32) {
    %c0_i32 = arith.constant 0 : i32
    %c0_i32_0 = arith.constant 0 : i32
    %c0_i32_1 = arith.constant 0 : i32
    return %c0_i32, %c0_i32_0 : i32, i32
  }
  func.func @transform_5(%arg0: i32) -> (i32, i32, i32) {
    %c0_i32 = arith.constant 0 : i32
    %c0_i32_0 = arith.constant 0 : i32
    %c0_i32_1 = arith.constant 0 : i32
    return %arg0, %c0_i32, %c0_i32_0 : i32, i32, i32
  }
}

module attributes {stable_mosaic.version = 11 : i64} {
  func.func @_self_attention_kernel(%arg0: i32, %arg1: memref<1x8x32xf32, #tpu.memory_space<vmem>>, %arg2: memref<32x96xf32, #tpu.memory_space<vmem>>, %arg3: memref<1x96xf32, #tpu.memory_space<vmem>>, %arg4: memref<32x32xf32, #tpu.memory_space<vmem>>, %arg5: memref<1x32xf32, #tpu.memory_space<vmem>>, %arg6: memref<1x8x32xf32, #tpu.memory_space<vmem>>) attributes {dimension_semantics = [#tpu.dimension_semantics<parallel>], iteration_bounds = array<i64: 2>, scalar_prefetch = 0 : i64, scratch_operands = 0 : i64, tpu.core_type = #tpu.core_type<tc>, window_params = [{transform_indices = @transform_0, window_bounds = array<i64: 1, 8, 32>}, {pipeline_mode = #tpu.pipeline_mode<synchronous>, transform_indices = @transform_1, window_bounds = array<i64: 32, 96>}, {pipeline_mode = #tpu.pipeline_mode<synchronous>, transform_indices = @transform_2, window_bounds = array<i64: 1, 96>}, {pipeline_mode = #tpu.pipeline_mode<synchronous>, transform_indices = @transform_3, window_bounds = array<i64: 32, 32>}, {pipeline_mode = #tpu.pipeline_mode<synchronous>, transform_indices = @transform_4, window_bounds = array<i64: 1, 32>}, {transform_indices = @transform_5, window_bounds = array<i64: 1, 8, 32>}]} {
    %c0 = arith.constant 0 : index
    %c0_0 = arith.constant 0 : index
    %c0_1 = arith.constant 0 : index
    %0 = vector.load %arg1[%c0, %c0_0, %c0_1] : memref<1x8x32xf32, #tpu.memory_space<vmem>>, vector<1x8x32xf32>
    %1 = vector.shape_cast %0 : vector<1x8x32xf32> to vector<8x32xf32>
    %c0_2 = arith.constant 0 : index
    %c0_3 = arith.constant 0 : index
    %2 = vector.load %arg2[%c0_2, %c0_3] : memref<32x96xf32, #tpu.memory_space<vmem>>, vector<32x96xf32>
    %cst = arith.constant dense<0.000000e+00> : vector<8x96xf32>
    %3 = tpu.matmul %1, %2, %cst {dimension_numbers = #tpu.dot_dimension_numbers<[1], [0], [0], [1], [0, 0, 1, 1], [], []>} : vector<8x32xf32>, vector<32x96xf32>, vector<8x96xf32> -> vector<8x96xf32>
    %c0_4 = arith.constant 0 : index
    %c0_5 = arith.constant 0 : index
    %4 = vector.load %arg3[%c0_4, %c0_5] : memref<1x96xf32, #tpu.memory_space<vmem>>, vector<1x96xf32>
    %5 = vector.broadcast %4 : vector<1x96xf32> to vector<8x96xf32>
    %6 = arith.addf %3, %5 : vector<8x96xf32>
    %cst_6 = arith.constant 0.000000e+00 : f32
    %7 = vector.broadcast %cst_6 : f32 to vector<8x32xf32>
    %8 = vector.extract_strided_slice %6 {offsets = [0, 0], sizes = [8, 8], strides = [1, 1]} : vector<8x96xf32> to vector<8x8xf32>
    %9 = vector.extract_strided_slice %6 {offsets = [0, 32], sizes = [8, 8], strides = [1, 1]} : vector<8x96xf32> to vector<8x8xf32>
    %10 = vector.extract_strided_slice %6 {offsets = [0, 64], sizes = [8, 8], strides = [1, 1]} : vector<8x96xf32> to vector<8x8xf32>
    %cst_7 = arith.constant dense<0.000000e+00> : vector<8x8xf32>
    %11 = tpu.matmul %8, %9, %cst_7 {dimension_numbers = #tpu.dot_dimension_numbers<[1], [1], [0], [0], [0, 0, 1, 0], [], []>} : vector<8x8xf32>, vector<8x8xf32>, vector<8x8xf32> -> vector<8x8xf32>
    %cst_8 = arith.constant dense<0xFF800000> : vector<8xf32>
    %12 = vector.multi_reduction <maximumf>, %11, %cst_8 [1] : vector<8x8xf32> to vector<8xf32>
    %13 = vector.shape_cast %12 : vector<8xf32> to vector<8x1xf32>
    %14 = vector.broadcast %13 : vector<8x1xf32> to vector<8x8xf32>
    %15 = arith.subf %11, %14 : vector<8x8xf32>
    %16 = math.exp %15 : vector<8x8xf32>
    %cst_9 = arith.constant dense<0.000000e+00> : vector<8xf32>
    %17 = vector.multi_reduction <add>, %16, %cst_9 [1] : vector<8x8xf32> to vector<8xf32>
    %18 = vector.shape_cast %17 : vector<8xf32> to vector<8x1xf32>
    %cst_10 = arith.constant dense<0.000000e+00> : vector<8x8xf32>
    %19 = tpu.matmul %16, %10, %cst_10 {dimension_numbers = #tpu.dot_dimension_numbers<[1], [0], [0], [1], [0, 0, 1, 1], [], []>} : vector<8x8xf32>, vector<8x8xf32>, vector<8x8xf32> -> vector<8x8xf32>
    %20 = tpu.reciprocal %18 {approx = true} : vector<8x1xf32> -> vector<8x1xf32>
    %21 = vector.broadcast %20 : vector<8x1xf32> to vector<8x8xf32>
    %22 = arith.mulf %19, %21 : vector<8x8xf32>
    %c0_11 = arith.constant 0 : index
    %c0_12 = arith.constant 0 : index
    %23 = vector.load %arg4[%c0_11, %c0_12] : memref<32x32xf32, #tpu.memory_space<vmem>>, vector<8x32xf32>
    %cst_13 = arith.constant dense<0.000000e+00> : vector<8x32xf32>
    %24 = tpu.matmul %22, %23, %cst_13 {dimension_numbers = #tpu.dot_dimension_numbers<[1], [0], [0], [1], [0, 0, 1, 1], [], []>} : vector<8x8xf32>, vector<8x32xf32>, vector<8x32xf32> -> vector<8x32xf32>
    %25 = arith.addf %7, %24 : vector<8x32xf32>
    %26 = vector.extract_strided_slice %6 {offsets = [0, 8], sizes = [8, 8], strides = [1, 1]} : vector<8x96xf32> to vector<8x8xf32>
    %27 = vector.extract_strided_slice %6 {offsets = [0, 40], sizes = [8, 8], strides = [1, 1]} : vector<8x96xf32> to vector<8x8xf32>
    %28 = vector.extract_strided_slice %6 {offsets = [0, 72], sizes = [8, 8], strides = [1, 1]} : vector<8x96xf32> to vector<8x8xf32>
    %cst_14 = arith.constant dense<0.000000e+00> : vector<8x8xf32>
    %29 = tpu.matmul %26, %27, %cst_14 {dimension_numbers = #tpu.dot_dimension_numbers<[1], [1], [0], [0], [0, 0, 1, 0], [], []>} : vector<8x8xf32>, vector<8x8xf32>, vector<8x8xf32> -> vector<8x8xf32>
    %cst_15 = arith.constant dense<0xFF800000> : vector<8xf32>
    %30 = vector.multi_reduction <maximumf>, %29, %cst_15 [1] : vector<8x8xf32> to vector<8xf32>
    %31 = vector.shape_cast %30 : vector<8xf32> to vector<8x1xf32>
    %32 = vector.broadcast %31 : vector<8x1xf32> to vector<8x8xf32>
    %33 = arith.subf %29, %32 : vector<8x8xf32>
    %34 = math.exp %33 : vector<8x8xf32>
    %cst_16 = arith.constant dense<0.000000e+00> : vector<8xf32>
    %35 = vector.multi_reduction <add>, %34, %cst_16 [1] : vector<8x8xf32> to vector<8xf32>
    %36 = vector.shape_cast %35 : vector<8xf32> to vector<8x1xf32>
    %cst_17 = arith.constant dense<0.000000e+00> : vector<8x8xf32>
    %37 = tpu.matmul %34, %28, %cst_17 {dimension_numbers = #tpu.dot_dimension_numbers<[1], [0], [0], [1], [0, 0, 1, 1], [], []>} : vector<8x8xf32>, vector<8x8xf32>, vector<8x8xf32> -> vector<8x8xf32>
    %38 = tpu.reciprocal %36 {approx = true} : vector<8x1xf32> -> vector<8x1xf32>
    %39 = vector.broadcast %38 : vector<8x1xf32> to vector<8x8xf32>
    %40 = arith.mulf %37, %39 : vector<8x8xf32>
    %c8 = arith.constant 8 : index
    %c0_18 = arith.constant 0 : index
    %41 = vector.load %arg4[%c8, %c0_18] : memref<32x32xf32, #tpu.memory_space<vmem>>, vector<8x32xf32>
    %cst_19 = arith.constant dense<0.000000e+00> : vector<8x32xf32>
    %42 = tpu.matmul %40, %41, %cst_19 {dimension_numbers = #tpu.dot_dimension_numbers<[1], [0], [0], [1], [0, 0, 1, 1], [], []>} : vector<8x8xf32>, vector<8x32xf32>, vector<8x32xf32> -> vector<8x32xf32>
    %43 = arith.addf %25, %42 : vector<8x32xf32>
    %44 = vector.extract_strided_slice %6 {offsets = [0, 16], sizes = [8, 8], strides = [1, 1]} : vector<8x96xf32> to vector<8x8xf32>
    %45 = vector.extract_strided_slice %6 {offsets = [0, 48], sizes = [8, 8], strides = [1, 1]} : vector<8x96xf32> to vector<8x8xf32>
    %46 = vector.extract_strided_slice %6 {offsets = [0, 80], sizes = [8, 8], strides = [1, 1]} : vector<8x96xf32> to vector<8x8xf32>
    %cst_20 = arith.constant dense<0.000000e+00> : vector<8x8xf32>
    %47 = tpu.matmul %44, %45, %cst_20 {dimension_numbers = #tpu.dot_dimension_numbers<[1], [1], [0], [0], [0, 0, 1, 0], [], []>} : vector<8x8xf32>, vector<8x8xf32>, vector<8x8xf32> -> vector<8x8xf32>
    %cst_21 = arith.constant dense<0xFF800000> : vector<8xf32>
    %48 = vector.multi_reduction <maximumf>, %47, %cst_21 [1] : vector<8x8xf32> to vector<8xf32>
    %49 = vector.shape_cast %48 : vector<8xf32> to vector<8x1xf32>
    %50 = vector.broadcast %49 : vector<8x1xf32> to vector<8x8xf32>
    %51 = arith.subf %47, %50 : vector<8x8xf32>
    %52 = math.exp %51 : vector<8x8xf32>
    %cst_22 = arith.constant dense<0.000000e+00> : vector<8xf32>
    %53 = vector.multi_reduction <add>, %52, %cst_22 [1] : vector<8x8xf32> to vector<8xf32>
    %54 = vector.shape_cast %53 : vector<8xf32> to vector<8x1xf32>
    %cst_23 = arith.constant dense<0.000000e+00> : vector<8x8xf32>
    %55 = tpu.matmul %52, %46, %cst_23 {dimension_numbers = #tpu.dot_dimension_numbers<[1], [0], [0], [1], [0, 0, 1, 1], [], []>} : vector<8x8xf32>, vector<8x8xf32>, vector<8x8xf32> -> vector<8x8xf32>
    %56 = tpu.reciprocal %54 {approx = true} : vector<8x1xf32> -> vector<8x1xf32>
    %57 = vector.broadcast %56 : vector<8x1xf32> to vector<8x8xf32>
    %58 = arith.mulf %55, %57 : vector<8x8xf32>
    %c16 = arith.constant 16 : index
    %c0_24 = arith.constant 0 : index
    %59 = vector.load %arg4[%c16, %c0_24] : memref<32x32xf32, #tpu.memory_space<vmem>>, vector<8x32xf32>
    %cst_25 = arith.constant dense<0.000000e+00> : vector<8x32xf32>
    %60 = tpu.matmul %58, %59, %cst_25 {dimension_numbers = #tpu.dot_dimension_numbers<[1], [0], [0], [1], [0, 0, 1, 1], [], []>} : vector<8x8xf32>, vector<8x32xf32>, vector<8x32xf32> -> vector<8x32xf32>
    %61 = arith.addf %43, %60 : vector<8x32xf32>
    %62 = vector.extract_strided_slice %6 {offsets = [0, 24], sizes = [8, 8], strides = [1, 1]} : vector<8x96xf32> to vector<8x8xf32>
    %63 = vector.extract_strided_slice %6 {offsets = [0, 56], sizes = [8, 8], strides = [1, 1]} : vector<8x96xf32> to vector<8x8xf32>
    %64 = vector.extract_strided_slice %6 {offsets = [0, 88], sizes = [8, 8], strides = [1, 1]} : vector<8x96xf32> to vector<8x8xf32>
    %cst_26 = arith.constant dense<0.000000e+00> : vector<8x8xf32>
    %65 = tpu.matmul %62, %63, %cst_26 {dimension_numbers = #tpu.dot_dimension_numbers<[1], [1], [0], [0], [0, 0, 1, 0], [], []>} : vector<8x8xf32>, vector<8x8xf32>, vector<8x8xf32> -> vector<8x8xf32>
    %cst_27 = arith.constant dense<0xFF800000> : vector<8xf32>
    %66 = vector.multi_reduction <maximumf>, %65, %cst_27 [1] : vector<8x8xf32> to vector<8xf32>
    %67 = vector.shape_cast %66 : vector<8xf32> to vector<8x1xf32>
    %68 = vector.broadcast %67 : vector<8x1xf32> to vector<8x8xf32>
    %69 = arith.subf %65, %68 : vector<8x8xf32>
    %70 = math.exp %69 : vector<8x8xf32>
    %cst_28 = arith.constant dense<0.000000e+00> : vector<8xf32>
    %71 = vector.multi_reduction <add>, %70, %cst_28 [1] : vector<8x8xf32> to vector<8xf32>
    %72 = vector.shape_cast %71 : vector<8xf32> to vector<8x1xf32>
    %cst_29 = arith.constant dense<0.000000e+00> : vector<8x8xf32>
    %73 = tpu.matmul %70, %64, %cst_29 {dimension_numbers = #tpu.dot_dimension_numbers<[1], [0], [0], [1], [0, 0, 1, 1], [], []>} : vector<8x8xf32>, vector<8x8xf32>, vector<8x8xf32> -> vector<8x8xf32>
    %74 = tpu.reciprocal %72 {approx = true} : vector<8x1xf32> -> vector<8x1xf32>
    %75 = vector.broadcast %74 : vector<8x1xf32> to vector<8x8xf32>
    %76 = arith.mulf %73, %75 : vector<8x8xf32>
    %c24 = arith.constant 24 : index
    %c0_30 = arith.constant 0 : index
    %77 = vector.load %arg4[%c24, %c0_30] : memref<32x32xf32, #tpu.memory_space<vmem>>, vector<8x32xf32>
    %cst_31 = arith.constant dense<0.000000e+00> : vector<8x32xf32>
    %78 = tpu.matmul %76, %77, %cst_31 {dimension_numbers = #tpu.dot_dimension_numbers<[1], [0], [0], [1], [0, 0, 1, 1], [], []>} : vector<8x8xf32>, vector<8x32xf32>, vector<8x32xf32> -> vector<8x32xf32>
    %79 = arith.addf %61, %78 : vector<8x32xf32>
    %c0_32 = arith.constant 0 : index
    %c0_33 = arith.constant 0 : index
    %80 = vector.load %arg5[%c0_32, %c0_33] : memref<1x32xf32, #tpu.memory_space<vmem>>, vector<1x32xf32>
    %81 = vector.broadcast %80 : vector<1x32xf32> to vector<8x32xf32>
    %82 = arith.addf %79, %81 : vector<8x32xf32>
    %c0_34 = arith.constant 0 : index
    %c0_35 = arith.constant 0 : index
    %c0_36 = arith.constant 0 : index
    %83 = vector.load %arg6[%c0_34, %c0_35, %c0_36] : memref<1x8x32xf32, #tpu.memory_space<vmem>>, vector<1x8x32xf32>
    %84 = vector.shape_cast %83 : vector<1x8x32xf32> to vector<8x32xf32>
    %85 = vector.shape_cast %82 : vector<8x32xf32> to vector<1x8x32xf32>
    tpu.vector_store %arg6[%c0_34, %c0_35, %c0_36], %85 {strides = array<i32>} : memref<1x8x32xf32, #tpu.memory_space<vmem>>, vector<1x8x32xf32>,
    return
  }
  func.func @transform_0(%arg0: i32) -> (i32, i32, i32) {
    %c0_i32 = arith.constant 0 : i32
    %c0_i32_0 = arith.constant 0 : i32
    %c0_i32_1 = arith.constant 0 : i32
    return %arg0, %c0_i32, %c0_i32_0 : i32, i32, i32
  }
  func.func @transform_1(%arg0: i32) -> (i32, i32) {
    %c0_i32 = arith.constant 0 : i32
    %c0_i32_0 = arith.constant 0 : i32
    %c0_i32_1 = arith.constant 0 : i32
    return %c0_i32, %c0_i32_0 : i32, i32
  }
  func.func @transform_2(%arg0: i32) -> (i32, i32) {
    %c0_i32 = arith.constant 0 : i32
    %c0_i32_0 = arith.constant 0 : i32
    %c0_i32_1 = arith.constant 0 : i32
    return %c0_i32, %c0_i32_0 : i32, i32
  }
  func.func @transform_3(%arg0: i32) -> (i32, i32) {
    %c0_i32 = arith.constant 0 : i32
    %c0_i32_0 = arith.constant 0 : i32
    %c0_i32_1 = arith.constant 0 : i32
    return %c0_i32, %c0_i32_0 : i32, i32
  }
  func.func @transform_4(%arg0: i32) -> (i32, i32) {
    %c0_i32 = arith.constant 0 : i32
    %c0_i32_0 = arith.constant 0 : i32
    %c0_i32_1 = arith.constant 0 : i32
    return %c0_i32, %c0_i32_0 : i32, i32
  }
  func.func @transform_5(%arg0: i32) -> (i32, i32, i32) {
    %c0_i32 = arith.constant 0 : i32
    %c0_i32_0 = arith.constant 0 : i32
    %c0_i32_1 = arith.constant 0 : i32
    return %arg0, %c0_i32, %c0_i32_0 : i32, i32, i32
  }
}

</mosaic_0001>

<bundles_post_ra>
// kernel: tpu_custom_call.1
= control target key start
LH: loop header
LB: loop body
LE: loop exit
PB: predicated region body
PF: predicated region fallthrough
CT: control target
= control target key end

     0   :  { %10 = vsyncpa [#allocation3], 0  ;;  %s1310_s0 = inlined_call_operand.hbm [shape: f32[2,8,32], index: 0, kind: input, shape index: {}]   ;;  %s1311_s1 = inlined_call_operand.hbm [shape: f32[32,96], index: 1, kind: input, shape index: {}]   ;;  %s1312_s2 = inlined_call_operand.vmem [shape: f32[1,96], index: 2, kind: input, shape index: {}]   ;;  %s1313_s3 = inlined_call_operand.hbm [shape: f32[32,32], index: 3, kind: input, shape index: {}]   ;;  %s1314_s4 = inlined_call_operand.vmem [shape: f32[1,32], index: 4, kind: input, shape index: {}]   ;;  %s1315_s5 = inlined_call_operand.hbm [shape: f32[2,8,32], index: 5, kind: output, shape index: {}]  }
   0x1   :  { %12 = vsyncpa [#allocation3 + $0x1], 0 }
   0x2   :  { %13 = vsyncpa [#allocation6], 0 }
   0x3   :  { %14 = vsyncpa [#allocation4], 0 }
   0x4   :  { %16 = vsyncpa [#allocation4 + $0x1], 0  ;;  %s1115_s18 = smov 0   ;;  %s1117_s19 = smov 0  }
   0x5   :  { %s1119_s20 = smov 0   ;;  %s1121_s21 = smov 0  }
   0x6 LB: > { %s174_s24 = sshll.u32 %s1311_s1, 4  ;;  %s1139_s25 = sadd.s32 4294967295, %s1068_s21   ;;  %s1068_s21 = sphi %s1121_s21, %s1326_s21   ;;  %s1064_s20 = sphi %s1119_s20, %s1325_s20   ;;  %s1060_s19 = sphi %s1117_s19, %s1324_s19   ;;  %s1056_s18 = sphi %s1115_s18, %s1323_s18   ;;  %s175_s24 = int_to_ptr.hbm [resolvable:$true] %s174_s24 }
   0x7   : > { %p778_p0 = scmp.ge.s32.totalorder %s1068_s21, 1  ;;  %p43_p1 = scmp.eq.s32.totalorder %s1139_s25, 0 }
   0x8   : > { %p163_p2 = scmp.lt.s32.totalorder %s1068_s21, 3  ;;  %s1070_s27 = smov [#allocation5]  }
   0x9   : > { %s176_s28 = sshll.u32 %s1070_s27, 4  ;;  %s191_s6 = sshll.u32 %s1313_s3, 4  ;;  %s177_s28 = int_to_ptr.vmem [resolvable:$true] %s176_s28  ;;  %s192_s6 = int_to_ptr.hbm [resolvable:$true] %s191_s6 }
   0xa   : > { %p1144_p3 = pnand %p778_p0, %p163_p2  ;;  %s1071_s7 = smov [#allocation7]  }
   0xb   : > { %s193_s8 = sshll.u32 %s1071_s7, 4  ;;  %s1072_s9 = smov 128   ;;  %s194_s8 = int_to_ptr.vmem [resolvable:$true] %s193_s8 }
   0xc   : > { %p822_p4 = pneg %p1144_p3  ;;  %s1073_s10 = smov 8  }
   0xd   : > { %s777_s11 = sadd.s32 4294967294, %s1068_s21   ;;  %s1158_s12 = sadd.s32 1, %s1068_s21  }
   0xe   : > { %p823_p6 = pnand %p822_p4, %p43_p1  ;;  %s26_s13 = ssub.s32 %s1068_s21, %s1158_s12 }
   0xf   : > { %s29_s14 = sadd.s32 1, %s1064_s20  ;;  %p27_p7 = scmp.eq.s32.totalorder %s26_s13, 0 }
  0x10   : > { %825 = dma.hbm_to_vmem [thread:$0]  (!%p823_p6), %s175_s24, 512, %s177_s28, [#allocation6], %s1072_s9, %s1072_s9, %s1073_s10  }
  0x11   : > { %828 = dma.hbm_to_vmem [thread:$0]  (!%p823_p6), %s192_s6, 512, %s194_s8, [#allocation6], %s1072_s9, %s1072_s9, %s1073_s10  }
  0x12   : > { %p36_p8 = scmp.ne.s32.totalorder %s1064_s20, %s1060_s19  ;;  %p37_p9 = scmp.eq.s32.totalorder %s1068_s21, 0 }
  0x13   : > { %p42_p10 = scmp.ne.s32.totalorder %s1060_s19, %s1056_s18  ;;  %p150_p13 = scmp.eq.s32.totalorder %s1139_s25, 1 }
  0x14   : > { %s1169_s15 = scalar_select %p27_p7, %s1064_s20, %s29_s14  }
  0x15   : > { %p1171_p11 = por %p37_p9, %p36_p8  ;;  %p1177_p12 = por %p43_p1, %p42_p10 }
  0x16   : > { %p156_p0 = scmp.eq.s32.totalorder %s777_s11, 1  ;;  %p839_p2 = scmp.lt.s32.totalorder %s1068_s21, 2 }
  0x17   : > { %s210_s22 = sand.u32 1, %s1064_s20   ;;  %p1184_p4 = por %p150_p13, %p36_p8 }
  0x18   : > { %p1188_p6 = por %p156_p0, %p42_p10  ;;  %s782_s27 = sshll.u32 %s210_s22, 3 }
  0x19   : > { %s783_s28 = sshll.u32 %s1068_s21, 3  ;;  %s214_s7 = scalar_lea.vmem [#allocation2], %s782_s27 }
  0x1a   : > { %s218_s6 = scalar_lea.hbm %s1310_s0, %s783_s28  ;;  %s222_s8 = sshll.u32 %s214_s7, 4  ;;  %s223_s8 = int_to_ptr.vmem [resolvable:$true] %s222_s8 }
  0x1b   : > { %s220_s9 = sshll.u32 %s218_s6, 4  ;;  %p1198_p7 = pnand %p839_p2, %p1171_p11  ;;  %s221_s9 = int_to_ptr.hbm [resolvable:$true] %s220_s9 }
  0x1c   : > { %s211_s11 = scalar_lea.sflag [#allocation3], %s210_s22  ;;  %s968_s13 = sshra.s32 %s221_s9, 4  ;;  %s969_s13 = int_to_ptr.hbm [resolvable:$true] %s968_s13 }
  0x1d   : > { %s970_s14 = scalar_lea.hbm %s969_s13, 8  ;;  %p972_p9 = pneg %p1198_p7 }
  0x1e   : > { %p971_p8 = scmp.ne.s32.totalorder %s969_s13, %s970_s14  ;;  %s975_s29 = scalar_lea.hbm %s1310_s0, 16 }
  0x1f   : > { %p976_p11 = scmp.lt.s32.totalorder %s969_s13, %s1310_s0  ;;  %p977_p0 = scmp.lt.s32.totalorder %s975_s29, %s970_s14 }
  0x20   : > { %p973_p10 = pnand %p972_p9, %p971_p8 }
  0x21   : > { %p978_p2 = por %p977_p0, %p976_p11 }
  0x22   : > { %p974_p13 = pneg %p973_p10 }
  0x24   : > { %p979_p5 = pnand %p978_p2, %p974_p13 }
  0x26   : > { %982 = shalt.err (!%p979_p5)
}
  0x27   : > { %832 = dma.hbm_to_vmem [thread:$0]  (!%p1198_p7), %s221_s9, 128, %s223_s8, %s211_s11  }
  0x28   : > { %231 = sbr.rel (%p1144_p3) target bundleno = 1237 (0x4d5), region = 40  ;;  %s1215_s22 = sand.u32 (!%p1144_p3), 1, %s1060_s19  }
  0x29   : > { %s785_s6 = sshll.u32 (!%p1144_p3), %s1215_s22, 3  ;;  %s234_s7 = scalar_lea.sflag (!%p1144_p3), [#allocation3], %s1215_s22 }
  0x2a   : > { %s237_s13 = scalar_lea.vmem (!%p1144_p3), [#allocation2], %s785_s6 }
  0x2d   : > { %1043 = dma.done.wait (%p1177_p12), %s234_s7, 128  }
  0x2e   : > { %1045 = vsyncadd (%p1177_p12), %s234_s7, 4294967168 }
  0x2f   : > { %1047 = dma.done.wait (%p43_p1), [#allocation6], 1024  }
  0x30   : > { %1049 = vsyncadd (%p43_p1), [#allocation6], 4294966272  ;;  %v279_v0 = vld [vmem:[#allocation5 + $0x18] sm:$0xff]  ;;  %v278_v1 = vld [vmem:[#allocation5 + $0x10] sm:$0xff]  ;;  %vm284_vm0 = vcmask 261120   ;;  %s1074_s8 = smov 120  }
  0x31   : > { %300 = vmatpush.msra.mxu0 %v279_v0  ;;  %v277_v2 = vld [vmem:[#allocation5 + $0x8] sm:$0xff]  ;;  %v276_v3 = vld [vmem:[#allocation5] sm:$0xff]  ;;  %v275_v4 = vld [vmem:[%s237_s13] sm:$0xff]  ;;  %s1075_s9 = smov 64   ;;  %s1076_s10 = smov 96   ;;  %vm311_vm1 = vcmask 64512  }
  0x32   : > { %v890_v5 = vld [vmem:[%s1312_s2] ss:$0 sm:$0xff]  ;;  %s1077_s11 = smov 88   ;;  %s1078_s14 = smov 72   ;;  %v373_v10 = vld [vmem:[#allocation7] sm:$0xff]  ;;  %v439_v31 = vld [vmem:[#allocation7 + $0x8] sm:$0xff] }
  0x33   : > { %301 = vmatpush.msra.mxu0 %v278_v1  ;;  %s1079_s27 = smov 104   ;;  %s1080_s28 = smov 80   ;;  %v641_v58 = vld [vmem:[#allocation7 + $0x18] sm:$0xff]  ;;  %v551_v59 = vld [vmem:[#allocation7 + $0x10] sm:$0xff] }
  0x34   : > { %s1081_s29 = smov 56   ;;  %s1082_s30 = smov 112  }
  0x35   : > { %302 = vmatpush.msra.mxu0 %v277_v2  ;;  %s1083_s16 = smov 40   ;;  %s1084_s7 = smov 48  }
  0x36   : > { %s807_s13 = sshll.u32 %s1139_s25, 3  ;;  %s673_s25 = scalar_lea.sflag [#allocation4], %s1215_s22 }
  0x37   : > { %303 = vmatpush.msra.mxu0 %v276_v3 }
  0x38   : > { %789 = vmatmul.msk.f32.vlgmr.msra.gmra.mxu0 %vm284_vm0, %v275_v4 }
  0xb5   : > { %v305_v6 = vpop.f32.mrf.mxu0 }
  0xb6   : > { %v1233_v7 = vadd.f32 %v890_v5, %v305_v6 }
  0xb8   : > { %374 = vrot.lane.b32.xlu2 %v1233_v7, %s1074_s8  ;;  %345 = vrot.lane.b32.xlu1 %v1233_v7, %s1075_s9  ;;  %s683_s8 = scalar_lea.hbm %s1315_s5, %s807_s13 }
  0xb9   : > { %309 = vrot.lane.b32.xlu0 %v1233_v7, %s1076_s10 }
  0xc0   : > { %376 = vrot.lane.b32.xlu1 %v1233_v7, %s1077_s11  ;;  %s274_s11 = scalar_lea.vmem [#allocation8], %s785_s6  ;;  %s1018_s6 = scalar_lea.hbm %s1315_s5, 16 }
  0xc8   : > { %578 = vrot.lane.b32.xlu1 %v1233_v7, %s1078_s14  ;;  %s685_s14 = sshll.u32 %s274_s11, 4  ;;  %s686_s14 = int_to_ptr.vmem [resolvable:$true] %s685_s14 }
  0xd0   : > { %576 = vrot.lane.b32.xlu1 %v1233_v7, %s1079_s27  ;;  %s687_s27 = sshll.u32 %s683_s8, 4  ;;  %s688_s27 = int_to_ptr.hbm [resolvable:$true] %s687_s27 }
  0xd8   : > { %488 = vrot.lane.b32.xlu1 %v1233_v7, %s1080_s28  ;;  %s1012_s28 = sshra.s32 %s688_s27, 4  ;;  %s1013_s28 = int_to_ptr.hbm [resolvable:$true] %s1012_s28 }
  0xd9   : > { %p1019_p12 = scmp.lt.s32.totalorder %s1013_s28, %s1315_s5 }
 0x112   : > { %v375_v12 = vpop.permute.xlu2 %374 }
 0x12a   : > { %v346_v8 = vpop.permute.xlu1 %345 }
 0x12b   : > { %v310_v9 = vpop.permute.xlu0 %309  ;;  %366 = vmatpush.msra.mxu2 %v346_v8  ;;  %v891_v8 = vld [vmem:[%s1314_s4] ss:$0 sm:$0xff] }
 0x12c   : > { %790 = vmatpush.xpose.msk.msra.mxu1 %vm311_vm1, %v310_v9 }
 0x12f   : > { %791 = vmatmul.msk.f32.vlgmr.msra.gmra.mxu1 %vm311_vm1, %v1233_v7 }
 0x130   : > { %458 = vmatpush.msrb.mxu1 %v439_v31 }
 0x132   : > { %v377_v11 = vpop.permute.xlu1 %376  ;;  %570 = vmatpush.msra.mxu1 %v551_v59 }
 0x133   : > { %793 = vmatpush.xpose.msk.msra.mxu3 %vm311_vm1, %v377_v11 }
 0x136   : > { %794 = vmatmul.msk.f32.vlgmr.msra.gmra.mxu3 %vm311_vm1, %v375_v12 }
 0x137   : > { %481 = vmatpush.msrb.mxu3 %v373_v10 }
 0x13a   : > { %v579_v13 = vpop.permute.xlu1 %578 }
 0x13b   : > { %802 = vmatpush.xpose.msk.msra.mxu3 %vm311_vm1, %v579_v13 }
 0x142   : > { %v577_v14 = vpop.permute.xlu1 %576 }
 0x14a   : > { %v489_v15 = vpop.permute.xlu1 %488 }
 0x14b   : > { %798 = vmatpush.xpose.msk.msrb.mxu0 %vm311_vm1, %v489_v15 }
 0x1ac   : > { %v333_v16 = vpop.f32.mrf.mxu1 }
 0x1ad   : > { %v336_v17 = vsel %vm311_vm1, %v333_v16, -inf }
 0x1ae   : > { %337 = vmax.xlane.f32.xlu0 %v336_v17 }
 0x1b9   : > { %v399_v18 = vpop.f32.mrf.mxu3 }
 0x1ba   : > { %v402_v19 = vsel %vm311_vm1, %v399_v18, -inf }
 0x1bb   : > { %403 = vmax.xlane.f32.xlu1 %v402_v19 }
 0x1c2   : > { %411 = vrot.lane.b32.xlu0 %v1233_v7, %s1081_s29  ;;  %s1014_s29 = scalar_lea.hbm %s1013_s28, 8 }
 0x1c3   : > { %p1015_p1 = scmp.ne.s32.totalorder %s1013_s28, %s1014_s29  ;;  %p1020_p7 = scmp.lt.s32.totalorder %s1018_s6, %s1014_s29 }
 0x1c5   : > { %p1016_p3 = pnand %p1015_p1, %p1184_p4  ;;  %p1021_p8 = por %p1020_p7, %p1019_p12 }
 0x1c7   : > { %p1017_p5 = pneg %p1016_p3 }
 0x1c9   : > { %p1022_p9 = pnand %p1021_p8, %p1017_p5 }
 0x221   : > { %v338_v20 = vpop.xlane.xlu0 %337 }
 0x222   : > { %v339_v21 = vsub.f32 %v333_v16, %v338_v20 }
 0x224   : > { %v340_v22 = vmul.f32 1.442695, %v339_v21 }
 0x226   : > { %892 = vpow2.f32 %v340_v22 }
 0x22c   : > { %v893_v23 = vpop.eup %892 }
 0x22d   : > { %792 = vmatmul.msk.f32.vlgmr.msra.gmra.mxu2 %vm311_vm1, %v893_v23  ;;  %v342_v24 = vsel %vm311_vm1, %v893_v23, 0.0 }
 0x22e   : > { %343 = vadd.xlane.f32.xlu2 %v342_v24  ;;  %v404_v25 = vpop.xlane.xlu1 %403 }
 0x22f   : > { %v405_v26 = vsub.f32 %v399_v18, %v404_v25 }
 0x231   : > { %v406_v27 = vmul.f32 1.442695, %v405_v26 }
 0x233   : > { %894 = vpow2.f32 %v406_v27 }
 0x234   : > { %v412_v28 = vpop.permute.xlu0 %411 }
 0x235   : > { %432 = vmatpush.msrb.mxu2 %v412_v28 }
 0x239   : > { %v895_v29 = vpop.eup %894 }
 0x23a   : > { %795 = vmatmul.msk.f32.vlgmr.msrb.gmra.mxu2 %vm311_vm1, %v895_v29  ;;  %v408_v30 = vsel %vm311_vm1, %v895_v29, 0.0 }
 0x23b   : > { %409 = vadd.xlane.f32.xlu1 %v408_v30 }
 0x246   : > { %486 = vrot.lane.b32.xlu2 %v1233_v7, %s1082_s30 }
 0x2a1   : > { %v344_v32 = vpop.xlane.xlu2 %343 }
 0x2a2   : > { %896 = vrcp.f32 %v344_v32 }
 0x2a8   : > { %v897_v34 = vpop.eup %896 }
 0x2a9   : > { %v487_v33 = vpop.permute.xlu2 %486 }
 0x2aa   : > { %799 = vmatmul.msk.f32.vlgmr.msrb.gmra.mxu0 %vm311_vm1, %v487_v33 }
 0x2ae   : > { %v410_v37 = vpop.xlane.xlu1 %409 }
 0x2af   : > { %898 = vrcp.f32 %v410_v37 }
 0x2b0   : > { %v368_v35 = vpop.f32.mrf.mxu2 }
 0x2b1   : > { %v372_v36 = vmul.f32 %v897_v34, %v368_v35 }
 0x2b3   : > { %797 = vmatmul.msk.f32.vlgmr.msrb.gmra.mxu3 %vm311_vm1, %v372_v36 }
 0x2b5   : > { %v899_v38 = vpop.eup %898 }
 0x2bb   : > { %803 = vmatmul.msk.f32.vlgmr.msra.gmra.mxu3 %vm311_vm1, %v577_v14 }
 0x2bd   : > { %v434_v39 = vpop.f32.mrf.mxu2 }
 0x2be   : > { %v438_v40 = vmul.f32 %v899_v38, %v434_v39 }
 0x2c0   : > { %796 = vmatmul.msk.f32.vlgmr.msrb.gmra.mxu1 %vm311_vm1, %v438_v40 }
 0x327   : > { %v511_v41 = vpop.f32.mrf.mxu0 }
 0x328   : > { %v514_v42 = vsel %vm311_vm1, %v511_v41, -inf }
 0x329   : > { %515 = vmax.xlane.f32.xlu2 %v514_v42 }
 0x336   : > { %v483_v43 = vpop.f32.mrf.mxu3 }
 0x33d   : > { %v460_v4 = vpop.f32.mrf.mxu1 }
 0x33e   : > { %v601_v44 = vpop.f32.mrf.mxu3  ;;  %v484_v5 = vadd.f32 %v483_v43, %v460_v4 }
 0x33f   : > { %v604_v45 = vsel %vm311_vm1, %v601_v44, -inf }
 0x340   : > { %605 = vmax.xlane.f32.xlu0 %v604_v45 }
 0x341   : > { %613 = vrot.lane.b32.xlu2 %v1233_v7, %s1083_s16 }
 0x354   : > { %523 = vrot.lane.b32.xlu0 %v1233_v7, %s1084_s7 }
 0x39c   : > { %v516_v46 = vpop.xlane.xlu2 %515 }
 0x39d   : > { %v517_v47 = vsub.f32 %v511_v41, %v516_v46 }
 0x39f   : > { %v518_v48 = vmul.f32 1.442695, %v517_v47 }
 0x3a1   : > { %900 = vpow2.f32 %v518_v48 }
 0x3a4   : > { %v614_v49 = vpop.permute.xlu2 %613 }
 0x3a5   : > { %634 = vmatpush.msra.mxu0 %v614_v49 }
 0x3a7   : > { %v901_v50 = vpop.eup %900 }
 0x3a8   : > { %v520_v51 = vsel %vm311_vm1, %v901_v50, 0.0 }
 0x3a9   : > { %521 = vadd.xlane.f32.xlu1 %v520_v51 }
 0x3b3   : > { %v606_v52 = vpop.xlane.xlu0 %605 }
 0x3b4   : > { %v607_v53 = vsub.f32 %v601_v44, %v606_v52 }
 0x3b6   : > { %v608_v54 = vmul.f32 1.442695, %v607_v53 }
 0x3b8   : > { %902 = vpow2.f32 %v608_v54 }
 0x3be   : > { %v903_v55 = vpop.eup %902 }
 0x3bf   : > { %804 = vmatmul.msk.f32.vlgmr.msra.gmra.mxu0 %vm311_vm1, %v903_v55  ;;  %v610_v56 = vsel %vm311_vm1, %v903_v55, 0.0 }
 0x3c0   : > { %611 = vadd.xlane.f32.xlu0 %v610_v56 }
 0x3c6   : > { %v524_v57 = vpop.permute.xlu0 %523 }
 0x3c7   : > { %544 = vmatpush.msra.mxu2 %v524_v57 }
 0x3c8   : > { %800 = vmatmul.msk.f32.vlgmr.msra.gmra.mxu2 %vm311_vm1, %v901_v50 }
 0x3c9   : > { %660 = vmatpush.msrb.mxu2 %v641_v58 }
 0x41c   : > { %v522_v0 = vpop.xlane.xlu1 %521 }
 0x433   : > { %v612_v60 = vpop.xlane.xlu0 %611 }
 0x434   : > { %904 = vrcp.f32 %v612_v60 }
 0x435   : > { %906 = vrcp.f32 %v522_v0 }
 0x43a   : > { %v905_v61 = vpop.eup %904 }
 0x43b   : > { %v907_v1 = vpop.eup %906 }
 0x43c   : > { %v636_v62 = vpop.f32.mrf.mxu0 }
 0x43d   : > { %v640_v63 = vmul.f32 %v905_v61, %v636_v62 }
 0x43f   : > { %805 = vmatmul.msk.f32.vlgmr.msrb.gmra.mxu2 %vm311_vm1, %v640_v63 }
 0x44b   : > { %v546_v2 = vpop.f32.mrf.mxu2 }
 0x44c   : > { %v550_v3 = vmul.f32 %v907_v1, %v546_v2 }
 0x44e   : > { %801 = vmatmul.msk.f32.vlgmr.msra.gmra.mxu1 %vm311_vm1, %v550_v3 }
 0x4c2   : > { %v662_v9 = vpop.f32.mrf.mxu2 }
 0x4cb   : > { %v572_v6 = vpop.f32.mrf.mxu1 }
 0x4cc   : > { %v575_v7 = vadd.f32 %v572_v6, %v484_v5 }
 0x4ce   : > { %v665_v10 = vadd.f32 %v662_v9, %v575_v7 }
 0x4d0   : > { %v670_v11 = vadd.f32 %v891_v8, %v665_v10 }
 0x4d2   : > { %671 = vst.msk [vmem:[%s274_s11] sm:$0xff] %vm284_vm0, %v670_v11 }
 0x4d3   : > { %1025 = shalt.err (!%p1022_p9)
}
 0x4d4   : > { %820 = dma.vmem_to_hbm [thread:$0]  (%p1184_p4), %s686_s14, 128, %s688_s27, %s673_s25  }
 0x4d5 PF: > { %s699_s22 = sand.u32 1, %s1056_s18   ;;  %p1322_p10 = scmp.ge.s32.totalorder %s1068_s21, 2 }
 0x4d6   : > { %s700_s26 = scalar_lea.sflag [#allocation4], %s699_s22 }
 0x4d7   : > { %p834_p13 = pnand %p1322_p10, %p1188_p6 }
 0x4d9   : > { %p835_p11 = pneg %p834_p13 }
 0x4db   : > { %1051 = dma.done.wait (%p835_p11), %s700_s26, 128  }
 0x4dc   : > { %1053 = vsyncadd (%p835_p11), %s700_s26, 4294967168  ;;  %p19_p0 = scmp.ge.s32.totalorder %s1158_s12, 4   ;;  %s1323_s18 = smov %s1060_s19 }
 0x4dd   : > { %s1324_s19 = smov %s1064_s20  ;;  %s1325_s20 = smov %s1169_s15 }
 0x4de   : > { %s1326_s21 = smov %s1158_s12  ;;  %21 = sbr.rel (!%p19_p0) target bundleno = 6 (0x6), region = 93 }
 0x4e3   :  { %706 = vsyncpa [#allocation3], 1 }
 0x4e4   :  { %708 = vsyncpa [#allocation3 + $0x1], 1 }
 0x4e5   :  { %709 = vsyncpa [#allocation6], 1 }
 0x4e6   :  { %710 = vsyncpa [#allocation4], 1 }
 0x4e7   :  { %712 = vsyncpa [#allocation4 + $0x1], 1 }

// kernel: tpu_custom_call.1
= control target key start
LH: loop header
LB: loop body
LE: loop exit
PB: predicated region body
PF: predicated region fallthrough
CT: control target
= control target key end

     0   :  { %10 = vsyncpa [#allocation3], 0  ;;  %s1310_s0 = inlined_call_operand.hbm [shape: f32[2,8,32], index: 0, kind: input, shape index: {}]   ;;  %s1311_s1 = inlined_call_operand.hbm [shape: f32[32,96], index: 1, kind: input, shape index: {}]   ;;  %s1312_s2 = inlined_call_operand.vmem [shape: f32[1,96], index: 2, kind: input, shape index: {}]   ;;  %s1313_s3 = inlined_call_operand.hbm [shape: f32[32,32], index: 3, kind: input, shape index: {}]   ;;  %s1314_s4 = inlined_call_operand.vmem [shape: f32[1,32], index: 4, kind: input, shape index: {}]   ;;  %s1315_s5 = inlined_call_operand.hbm [shape: f32[2,8,32], index: 5, kind: output, shape index: {}]  }
   0x1   :  { %12 = vsyncpa [#allocation3 + $0x1], 0 }
   0x2   :  { %13 = vsyncpa [#allocation6], 0 }
   0x3   :  { %14 = vsyncpa [#allocation4], 0 }
   0x4   :  { %16 = vsyncpa [#allocation4 + $0x1], 0  ;;  %s1115_s18 = smov 0   ;;  %s1117_s19 = smov 0  }
   0x5   :  { %s1119_s20 = smov 0   ;;  %s1121_s21 = smov 0  }
   0x6 LB: > { %s174_s24 = sshll.u32 %s1311_s1, 4  ;;  %s1139_s25 = sadd.s32 4294967295, %s1068_s21   ;;  %s1068_s21 = sphi %s1121_s21, %s1326_s21   ;;  %s1064_s20 = sphi %s1119_s20, %s1325_s20   ;;  %s1060_s19 = sphi %s1117_s19, %s1324_s19   ;;  %s1056_s18 = sphi %s1115_s18, %s1323_s18   ;;  %s175_s24 = int_to_ptr.hbm [resolvable:$true] %s174_s24 }
   0x7   : > { %p778_p0 = scmp.ge.s32.totalorder %s1068_s21, 1  ;;  %p43_p1 = scmp.eq.s32.totalorder %s1139_s25, 0 }
   0x8   : > { %p163_p2 = scmp.lt.s32.totalorder %s1068_s21, 3  ;;  %s1070_s27 = smov [#allocation5]  }
   0x9   : > { %s176_s28 = sshll.u32 %s1070_s27, 4  ;;  %s191_s6 = sshll.u32 %s1313_s3, 4  ;;  %s177_s28 = int_to_ptr.vmem [resolvable:$true] %s176_s28  ;;  %s192_s6 = int_to_ptr.hbm [resolvable:$true] %s191_s6 }
   0xa   : > { %p1144_p3 = pnand %p778_p0, %p163_p2  ;;  %s1071_s7 = smov [#allocation7]  }
   0xb   : > { %s193_s8 = sshll.u32 %s1071_s7, 4  ;;  %s1072_s9 = smov 128   ;;  %s194_s8 = int_to_ptr.vmem [resolvable:$true] %s193_s8 }
   0xc   : > { %p822_p4 = pneg %p1144_p3  ;;  %s1073_s10 = smov 8  }
   0xd   : > { %s777_s11 = sadd.s32 4294967294, %s1068_s21   ;;  %s1158_s12 = sadd.s32 1, %s1068_s21  }
   0xe   : > { %p823_p6 = pnand %p822_p4, %p43_p1  ;;  %s26_s13 = ssub.s32 %s1068_s21, %s1158_s12 }
   0xf   : > { %s29_s14 = sadd.s32 1, %s1064_s20  ;;  %p27_p7 = scmp.eq.s32.totalorder %s26_s13, 0 }
  0x10   : > { %825 = dma.hbm_to_vmem [thread:$0]  (!%p823_p6), %s175_s24, 512, %s177_s28, [#allocation6], %s1072_s9, %s1072_s9, %s1073_s10  }
  0x11   : > { %828 = dma.hbm_to_vmem [thread:$0]  (!%p823_p6), %s192_s6, 512, %s194_s8, [#allocation6], %s1072_s9, %s1072_s9, %s1073_s10  }
  0x12   : > { %p36_p8 = scmp.ne.s32.totalorder %s1064_s20, %s1060_s19  ;;  %p37_p9 = scmp.eq.s32.totalorder %s1068_s21, 0 }
  0x13   : > { %p42_p10 = scmp.ne.s32.totalorder %s1060_s19, %s1056_s18  ;;  %p150_p13 = scmp.eq.s32.totalorder %s1139_s25, 1 }
  0x14   : > { %s1169_s15 = scalar_select %p27_p7, %s1064_s20, %s29_s14  }
  0x15   : > { %p1171_p11 = por %p37_p9, %p36_p8  ;;  %p1177_p12 = por %p43_p1, %p42_p10 }
  0x16   : > { %p156_p0 = scmp.eq.s32.totalorder %s777_s11, 1  ;;  %p839_p2 = scmp.lt.s32.totalorder %s1068_s21, 2 }
  0x17   : > { %s210_s22 = sand.u32 1, %s1064_s20   ;;  %p1184_p4 = por %p150_p13, %p36_p8 }
  0x18   : > { %p1188_p6 = por %p156_p0, %p42_p10  ;;  %s782_s27 = sshll.u32 %s210_s22, 3 }
  0x19   : > { %s783_s28 = sshll.u32 %s1068_s21, 3  ;;  %s214_s7 = scalar_lea.vmem [#allocation2], %s782_s27 }
  0x1a   : > { %s218_s6 = scalar_lea.hbm %s1310_s0, %s783_s28  ;;  %s222_s8 = sshll.u32 %s214_s7, 4  ;;  %s223_s8 = int_to_ptr.vmem [resolvable:$true] %s222_s8 }
  0x1b   : > { %s220_s9 = sshll.u32 %s218_s6, 4  ;;  %p1198_p7 = pnand %p839_p2, %p1171_p11  ;;  %s221_s9 = int_to_ptr.hbm [resolvable:$true] %s220_s9 }
  0x1c   : > { %s211_s11 = scalar_lea.sflag [#allocation3], %s210_s22  ;;  %s968_s13 = sshra.s32 %s221_s9, 4  ;;  %s969_s13 = int_to_ptr.hbm [resolvable:$true] %s968_s13 }
  0x1d   : > { %s970_s14 = scalar_lea.hbm %s969_s13, 8  ;;  %p972_p9 = pneg %p1198_p7 }
  0x1e   : > { %p971_p8 = scmp.ne.s32.totalorder %s969_s13, %s970_s14  ;;  %s975_s29 = scalar_lea.hbm %s1310_s0, 16 }
  0x1f   : > { %p976_p11 = scmp.lt.s32.totalorder %s969_s13, %s1310_s0  ;;  %p977_p0 = scmp.lt.s32.totalorder %s975_s29, %s970_s14 }
  0x20   : > { %p973_p10 = pnand %p972_p9, %p971_p8 }
  0x21   : > { %p978_p2 = por %p977_p0, %p976_p11 }
  0x22   : > { %p974_p13 = pneg %p973_p10 }
  0x24   : > { %p979_p5 = pnand %p978_p2, %p974_p13 }
  0x26   : > { %982 = shalt.err (!%p979_p5)
}
  0x27   : > { %832 = dma.hbm_to_vmem [thread:$0]  (!%p1198_p7), %s221_s9, 128, %s223_s8, %s211_s11  }
  0x28   : > { %231 = sbr.rel (%p1144_p3) target bundleno = 1237 (0x4d5), region = 40  ;;  %s1215_s22 = sand.u32 (!%p1144_p3), 1, %s1060_s19  }
  0x29   : > { %s785_s6 = sshll.u32 (!%p1144_p3), %s1215_s22, 3  ;;  %s234_s7 = scalar_lea.sflag (!%p1144_p3), [#allocation3], %s1215_s22 }
  0x2a   : > { %s237_s13 = scalar_lea.vmem (!%p1144_p3), [#allocation2], %s785_s6 }
  0x2d   : > { %1043 = dma.done.wait (%p1177_p12), %s234_s7, 128  }
  0x2e   : > { %1045 = vsyncadd (%p1177_p12), %s234_s7, 4294967168 }
  0x2f   : > { %1047 = dma.done.wait (%p43_p1), [#allocation6], 1024  }
  0x30   : > { %1049 = vsyncadd (%p43_p1), [#allocation6], 4294966272  ;;  %v279_v0 = vld [vmem:[#allocation5 + $0x18] sm:$0xff]  ;;  %v278_v1 = vld [vmem:[#allocation5 + $0x10] sm:$0xff]  ;;  %vm284_vm0 = vcmask 261120   ;;  %s1074_s8 = smov 120  }
  0x31   : > { %300 = vmatpush.msra.mxu0 %v279_v0  ;;  %v277_v2 = vld [vmem:[#allocation5 + $0x8] sm:$0xff]  ;;  %v276_v3 = vld [vmem:[#allocation5] sm:$0xff]  ;;  %v275_v4 = vld [vmem:[%s237_s13] sm:$0xff]  ;;  %s1075_s9 = smov 64   ;;  %s1076_s10 = smov 96   ;;  %vm311_vm1 = vcmask 64512  }
  0x32   : > { %v890_v5 = vld [vmem:[%s1312_s2] ss:$0 sm:$0xff]  ;;  %s1077_s11 = smov 88   ;;  %s1078_s14 = smov 72   ;;  %v373_v10 = vld [vmem:[#allocation7] sm:$0xff]  ;;  %v439_v31 = vld [vmem:[#allocation7 + $0x8] sm:$0xff] }
  0x33   : > { %301 = vmatpush.msra.mxu0 %v278_v1  ;;  %s1079_s27 = smov 104   ;;  %s1080_s28 = smov 80   ;;  %v641_v58 = vld [vmem:[#allocation7 + $0x18] sm:$0xff]  ;;  %v551_v59 = vld [vmem:[#allocation7 + $0x10] sm:$0xff] }
  0x34   : > { %s1081_s29 = smov 56   ;;  %s1082_s30 = smov 112  }
  0x35   : > { %302 = vmatpush.msra.mxu0 %v277_v2  ;;  %s1083_s16 = smov 40   ;;  %s1084_s7 = smov 48  }
  0x36   : > { %s807_s13 = sshll.u32 %s1139_s25, 3  ;;  %s673_s25 = scalar_lea.sflag [#allocation4], %s1215_s22 }
  0x37   : > { %303 = vmatpush.msra.mxu0 %v276_v3 }
  0x38   : > { %789 = vmatmul.msk.f32.vlgmr.msra.gmra.mxu0 %vm284_vm0, %v275_v4 }
  0xb5   : > { %v305_v6 = vpop.f32.mrf.mxu0 }
  0xb6   : > { %v1233_v7 = vadd.f32 %v890_v5, %v305_v6 }
  0xb8   : > { %374 = vrot.lane.b32.xlu2 %v1233_v7, %s1074_s8  ;;  %345 = vrot.lane.b32.xlu1 %v1233_v7, %s1075_s9  ;;  %s683_s8 = scalar_lea.hbm %s1315_s5, %s807_s13 }
  0xb9   : > { %309 = vrot.lane.b32.xlu0 %v1233_v7, %s1076_s10 }
  0xc0   : > { %376 = vrot.lane.b32.xlu1 %v1233_v7, %s1077_s11  ;;  %s274_s11 = scalar_lea.vmem [#allocation8], %s785_s6  ;;  %s1018_s6 = scalar_lea.hbm %s1315_s5, 16 }
  0xc8   : > { %578 = vrot.lane.b32.xlu1 %v1233_v7, %s1078_s14  ;;  %s685_s14 = sshll.u32 %s274_s11, 4  ;;  %s686_s14 = int_to_ptr.vmem [resolvable:$true] %s685_s14 }
  0xd0   : > { %576 = vrot.lane.b32.xlu1 %v1233_v7, %s1079_s27  ;;  %s687_s27 = sshll.u32 %s683_s8, 4  ;;  %s688_s27 = int_to_ptr.hbm [resolvable:$true] %s687_s27 }
  0xd8   : > { %488 = vrot.lane.b32.xlu1 %v1233_v7, %s1080_s28  ;;  %s1012_s28 = sshra.s32 %s688_s27, 4  ;;  %s1013_s28 = int_to_ptr.hbm [resolvable:$true] %s1012_s28 }
  0xd9   : > { %p1019_p12 = scmp.lt.s32.totalorder %s1013_s28, %s1315_s5 }
 0x112   : > { %v375_v12 = vpop.permute.xlu2 %374 }
 0x12a   : > { %v346_v8 = vpop.permute.xlu1 %345 }
 0x12b   : > { %v310_v9 = vpop.permute.xlu0 %309  ;;  %366 = vmatpush.msra.mxu2 %v346_v8  ;;  %v891_v8 = vld [vmem:[%s1314_s4] ss:$0 sm:$0xff] }
 0x12c   : > { %790 = vmatpush.xpose.msk.msra.mxu1 %vm311_vm1, %v310_v9 }
 0x12f   : > { %791 = vmatmul.msk.f32.vlgmr.msra.gmra.mxu1 %vm311_vm1, %v1233_v7 }
 0x130   : > { %458 = vmatpush.msrb.mxu1 %v439_v31 }
 0x132   : > { %v377_v11 = vpop.permute.xlu1 %376  ;;  %570 = vmatpush.msra.mxu1 %v551_v59 }
 0x133   : > { %793 = vmatpush.xpose.msk.msra.mxu3 %vm311_vm1, %v377_v11 }
 0x136   : > { %794 = vmatmul.msk.f32.vlgmr.msra.gmra.mxu3 %vm311_vm1, %v375_v12 }
 0x137   : > { %481 = vmatpush.msrb.mxu3 %v373_v10 }
 0x13a   : > { %v579_v13 = vpop.permute.xlu1 %578 }
 0x13b   : > { %802 = vmatpush.xpose.msk.msra.mxu3 %vm311_vm1, %v579_v13 }
 0x142   : > { %v577_v14 = vpop.permute.xlu1 %576 }
 0x14a   : > { %v489_v15 = vpop.permute.xlu1 %488 }
 0x14b   : > { %798 = vmatpush.xpose.msk.msrb.mxu0 %vm311_vm1, %v489_v15 }
 0x1ac   : > { %v333_v16 = vpop.f32.mrf.mxu1 }
 0x1ad   : > { %v336_v17 = vsel %vm311_vm1, %v333_v16, -inf }
 0x1ae   : > { %337 = vmax.xlane.f32.xlu0 %v336_v17 }
 0x1b9   : > { %v399_v18 = vpop.f32.mrf.mxu3 }
 0x1ba   : > { %v402_v19 = vsel %vm311_vm1, %v399_v18, -inf }
 0x1bb   : > { %403 = vmax.xlane.f32.xlu1 %v402_v19 }
 0x1c2   : > { %411 = vrot.lane.b32.xlu0 %v1233_v7, %s1081_s29  ;;  %s1014_s29 = scalar_lea.hbm %s1013_s28, 8 }
 0x1c3   : > { %p1015_p1 = scmp.ne.s32.totalorder %s1013_s28, %s1014_s29  ;;  %p1020_p7 = scmp.lt.s32.totalorder %s1018_s6, %s1014_s29 }
 0x1c5   : > { %p1016_p3 = pnand %p1015_p1, %p1184_p4  ;;  %p1021_p8 = por %p1020_p7, %p1019_p12 }
 0x1c7   : > { %p1017_p5 = pneg %p1016_p3 }
 0x1c9   : > { %p1022_p9 = pnand %p1021_p8, %p1017_p5 }
 0x221   : > { %v338_v20 = vpop.xlane.xlu0 %337 }
 0x222   : > { %v339_v21 = vsub.f32 %v333_v16, %v338_v20 }
 0x224   : > { %v340_v22 = vmul.f32 1.442695, %v339_v21 }
 0x226   : > { %892 = vpow2.f32 %v340_v22 }
 0x22c   : > { %v893_v23 = vpop.eup %892 }
 0x22d   : > { %792 = vmatmul.msk.f32.vlgmr.msra.gmra.mxu2 %vm311_vm1, %v893_v23  ;;  %v342_v24 = vsel %vm311_vm1, %v893_v23, 0.0 }
 0x22e   : > { %343 = vadd.xlane.f32.xlu2 %v342_v24  ;;  %v404_v25 = vpop.xlane.xlu1 %403 }
 0x22f   : > { %v405_v26 = vsub.f32 %v399_v18, %v404_v25 }
 0x231   : > { %v406_v27 = vmul.f32 1.442695, %v405_v26 }
 0x233   : > { %894 = vpow2.f32 %v406_v27 }
 0x234   : > { %v412_v28 = vpop.permute.xlu0 %411 }
 0x235   : > { %432 = vmatpush.msrb.mxu2 %v412_v28 }
 0x239   : > { %v895_v29 = vpop.eup %894 }
 0x23a   : > { %795 = vmatmul.msk.f32.vlgmr.msrb.gmra.mxu2 %vm311_vm1, %v895_v29  ;;  %v408_v30 = vsel %vm311_vm1, %v895_v29, 0.0 }
 0x23b   : > { %409 = vadd.xlane.f32.xlu1 %v408_v30 }
 0x246   : > { %486 = vrot.lane.b32.xlu2 %v1233_v7, %s1082_s30 }
 0x2a1   : > { %v344_v32 = vpop.xlane.xlu2 %343 }
 0x2a2   : > { %896 = vrcp.f32 %v344_v32 }
 0x2a8   : > { %v897_v34 = vpop.eup %896 }
 0x2a9   : > { %v487_v33 = vpop.permute.xlu2 %486 }
 0x2aa   : > { %799 = vmatmul.msk.f32.vlgmr.msrb.gmra.mxu0 %vm311_vm1, %v487_v33 }
 0x2ae   : > { %v410_v37 = vpop.xlane.xlu1 %409 }
 0x2af   : > { %898 = vrcp.f32 %v410_v37 }
 0x2b0   : > { %v368_v35 = vpop.f32.mrf.mxu2 }
 0x2b1   : > { %v372_v36 = vmul.f32 %v897_v34, %v368_v35 }
 0x2b3   : > { %797 = vmatmul.msk.f32.vlgmr.msrb.gmra.mxu3 %vm311_vm1, %v372_v36 }
 0x2b5   : > { %v899_v38 = vpop.eup %898 }
 0x2bb   : > { %803 = vmatmul.msk.f32.vlgmr.msra.gmra.mxu3 %vm311_vm1, %v577_v14 }
 0x2bd   : > { %v434_v39 = vpop.f32.mrf.mxu2 }
 0x2be   : > { %v438_v40 = vmul.f32 %v899_v38, %v434_v39 }
 0x2c0   : > { %796 = vmatmul.msk.f32.vlgmr.msrb.gmra.mxu1 %vm311_vm1, %v438_v40 }
 0x327   : > { %v511_v41 = vpop.f32.mrf.mxu0 }
 0x328   : > { %v514_v42 = vsel %vm311_vm1, %v511_v41, -inf }
 0x329   : > { %515 = vmax.xlane.f32.xlu2 %v514_v42 }
 0x336   : > { %v483_v43 = vpop.f32.mrf.mxu3 }
 0x33d   : > { %v460_v4 = vpop.f32.mrf.mxu1 }
 0x33e   : > { %v601_v44 = vpop.f32.mrf.mxu3  ;;  %v484_v5 = vadd.f32 %v483_v43, %v460_v4 }
 0x33f   : > { %v604_v45 = vsel %vm311_vm1, %v601_v44, -inf }
 0x340   : > { %605 = vmax.xlane.f32.xlu0 %v604_v45 }
 0x341   : > { %613 = vrot.lane.b32.xlu2 %v1233_v7, %s1083_s16 }
 0x354   : > { %523 = vrot.lane.b32.xlu0 %v1233_v7, %s1084_s7 }
 0x39c   : > { %v516_v46 = vpop.xlane.xlu2 %515 }
 0x39d   : > { %v517_v47 = vsub.f32 %v511_v41, %v516_v46 }
 0x39f   : > { %v518_v48 = vmul.f32 1.442695, %v517_v47 }
 0x3a1   : > { %900 = vpow2.f32 %v518_v48 }
 0x3a4   : > { %v614_v49 = vpop.permute.xlu2 %613 }
 0x3a5   : > { %634 = vmatpush.msra.mxu0 %v614_v49 }
 0x3a7   : > { %v901_v50 = vpop.eup %900 }
 0x3a8   : > { %v520_v51 = vsel %vm311_vm1, %v901_v50, 0.0 }
 0x3a9   : > { %521 = vadd.xlane.f32.xlu1 %v520_v51 }
 0x3b3   : > { %v606_v52 = vpop.xlane.xlu0 %605 }
 0x3b4   : > { %v607_v53 = vsub.f32 %v601_v44, %v606_v52 }
 0x3b6   : > { %v608_v54 = vmul.f32 1.442695, %v607_v53 }
 0x3b8   : > { %902 = vpow2.f32 %v608_v54 }
 0x3be   : > { %v903_v55 = vpop.eup %902 }
 0x3bf   : > { %804 = vmatmul.msk.f32.vlgmr.msra.gmra.mxu0 %vm311_vm1, %v903_v55  ;;  %v610_v56 = vsel %vm311_vm1, %v903_v55, 0.0 }
 0x3c0   : > { %611 = vadd.xlane.f32.xlu0 %v610_v56 }
 0x3c6   : > { %v524_v57 = vpop.permute.xlu0 %523 }
 0x3c7   : > { %544 = vmatpush.msra.mxu2 %v524_v57 }
 0x3c8   : > { %800 = vmatmul.msk.f32.vlgmr.msra.gmra.mxu2 %vm311_vm1, %v901_v50 }
 0x3c9   : > { %660 = vmatpush.msrb.mxu2 %v641_v58 }
 0x41c   : > { %v522_v0 = vpop.xlane.xlu1 %521 }
 0x433   : > { %v612_v60 = vpop.xlane.xlu0 %611 }
 0x434   : > { %904 = vrcp.f32 %v612_v60 }
 0x435   : > { %906 = vrcp.f32 %v522_v0 }
 0x43a   : > { %v905_v61 = vpop.eup %904 }
 0x43b   : > { %v907_v1 = vpop.eup %906 }
 0x43c   : > { %v636_v62 = vpop.f32.mrf.mxu0 }
 0x43d   : > { %v640_v63 = vmul.f32 %v905_v61, %v636_v62 }
 0x43f   : > { %805 = vmatmul.msk.f32.vlgmr.msrb.gmra.mxu2 %vm311_vm1, %v640_v63 }
 0x44b   : > { %v546_v2 = vpop.f32.mrf.mxu2 }
 0x44c   : > { %v550_v3 = vmul.f32 %v907_v1, %v546_v2 }
 0x44e   : > { %801 = vmatmul.msk.f32.vlgmr.msra.gmra.mxu1 %vm311_vm1, %v550_v3 }
 0x4c2   : > { %v662_v9 = vpop.f32.mrf.mxu2 }
 0x4cb   : > { %v572_v6 = vpop.f32.mrf.mxu1 }
 0x4cc   : > { %v575_v7 = vadd.f32 %v572_v6, %v484_v5 }
 0x4ce   : > { %v665_v10 = vadd.f32 %v662_v9, %v575_v7 }
 0x4d0   : > { %v670_v11 = vadd.f32 %v891_v8, %v665_v10 }
 0x4d2   : > { %671 = vst.msk [vmem:[%s274_s11] sm:$0xff] %vm284_vm0, %v670_v11 }
 0x4d3   : > { %1025 = shalt.err (!%p1022_p9)
}
 0x4d4   : > { %820 = dma.vmem_to_hbm [thread:$0]  (%p1184_p4), %s686_s14, 128, %s688_s27, %s673_s25  }
 0x4d5 PF: > { %s699_s22 = sand.u32 1, %s1056_s18   ;;  %p1322_p10 = scmp.ge.s32.totalorder %s1068_s21, 2 }
 0x4d6   : > { %s700_s26 = scalar_lea.sflag [#allocation4], %s699_s22 }
 0x4d7   : > { %p834_p13 = pnand %p1322_p10, %p1188_p6 }
 0x4d9   : > { %p835_p11 = pneg %p834_p13 }
 0x4db   : > { %1051 = dma.done.wait (%p835_p11), %s700_s26, 128  }
 0x4dc   : > { %1053 = vsyncadd (%p835_p11), %s700_s26, 4294967168  ;;  %p19_p0 = scmp.ge.s32.totalorder %s1158_s12, 4   ;;  %s1323_s18 = smov %s1060_s19 }
 0x4dd   : > { %s1324_s19 = smov %s1064_s20  ;;  %s1325_s20 = smov %s1169_s15 }
 0x4de   : > { %s1326_s21 = smov %s1158_s12  ;;  %21 = sbr.rel (!%p19_p0) target bundleno = 6 (0x6), region = 93 }
 0x4e3   :  { %706 = vsyncpa [#allocation3], 1 }
 0x4e4   :  { %708 = vsyncpa [#allocation3 + $0x1], 1 }
 0x4e5   :  { %709 = vsyncpa [#allocation6], 1 }
 0x4e6   :  { %710 = vsyncpa [#allocation4], 1 }
 0x4e7   :  { %712 = vsyncpa [#allocation4 + $0x1], 1 }

</bundles_post_ra>
